<compile_context>
chip_gen: v7x
topology: tpu7x:2x2x1
jax: 0.10.0
libtpu: 0.0.40
codegen_flags: <defaults>
</compile_context>

<pallas_src>
import functools
import math

import jax
import jax.numpy as jnp
from jax import lax
from jax.experimental import pallas as pl
from jax.experimental.pallas import tpu as pltpu


def relmap_kernel(x_ref, w1_ref, b1_ref, w2_ref, b2_ref, o_ref, *, n, j):
    """One pooled-width step: pool(j) -> fused 1x1 convs -> per-batch outer
    contraction into the resident (H, H) accumulator; mean+softmax at the end."""
    p = pl.program_id(0)
    c4 = w1_ref.shape[0]

    @pl.when(p == 0)
    def _():
        o_ref[...] = jnp.zeros_like(o_ref)

    # ---- AvgPool(1, j) folded before the (fused) 1x1 convs (both linear) ----
    pooled = x_ref[0]
    for jj in range(1, j):                       # j-1 cheap VPU adds
        pooled = pooled + x_ref[jj]
    pooled = pooled * (1.0 / j)                  # (N, num_classes, H)

    # ---- per-batch: fused convs (K = num_classes) + outer contraction -------
    acc = None
    for nn in range(n):                          # static, small batch
        x_n = pooled[nn]                                                 # (ncls, H)
        f1 = jnp.dot(w1_ref[...], x_n,
                     preferred_element_type=jnp.float32) + b1_ref[...]   # (C4, H)
        f2 = jnp.dot(w2_ref[...], x_n,
                     preferred_element_type=jnp.float32) + b2_ref[...]   # (C4, H)
        # contrib[i, k] = sum_c f1[c, i] * f2[c, k]
        contrib = lax.dot_general(f1, f2, (((0,), (0,)), ((), ())),
                                  preferred_element_type=jnp.float32)
        acc = contrib if acc is None else acc + contrib
    o_ref[...] += acc

    # ---- epilogue: mean over (batch, channels) + softmax ---------------------
    @pl.when(p == pl.num_programs(0) - 1)
    def _():
        m = o_ref[...] * (1.0 / (n * c4))
        m = m - jnp.max(m, axis=-1, keepdims=True)
        e = jnp.exp(m)
        # exact reciprocal keeps the 1e-5 accuracy check
        o_ref[...] = e * pl.reciprocal(jnp.sum(e, axis=-1, keepdims=True))


def get_relative_map_pallas(x_nchw, params, num_joints):
    wemb, bemb, w1, b1, w2, b2 = params
    N, ncls, H, W = x_nchw.shape
    assert W % num_joints == 0, "width must be a multiple of num_joints"
    C4 = w1.shape[1]
    wp = W // num_joints

    # Fold the embedding conv into conv1/conv2 (weight algebra, done once):
    #   f_i = pooled_x @ (wemb @ wi) + (bemb @ wi + bi)
    w1_eff = jnp.transpose(wemb @ w1)            # (C4, num_classes)
    w2_eff = jnp.transpose(wemb @ w2)
    b1_eff = (bemb @ w1 + b1).reshape(C4, 1)
    b2_eff = (bemb @ w2 + b2).reshape(C4, 1)

    # NCHW -> (W, N, num_classes, H): width leading (grid axis), batch as a
    # leading block dim (whole-tile per-batch slices), H on the lane axis.
    x_wnch = jnp.transpose(x_nchw, (3, 0, 1, 2))

    kernel = functools.partial(relmap_kernel, n=N, j=num_joints)
    out = pl.pallas_call(
        kernel,
        out_shape=jax.ShapeDtypeStruct((H, H), jnp.float32),
        grid=(wp,),
        in_specs=[
            pl.BlockSpec((num_joints, N, ncls, H), lambda p: (p, 0, 0, 0)),
            pl.BlockSpec((C4, ncls), lambda p: (0, 0)),
            pl.BlockSpec((C4, 1), lambda p: (0, 0)),
            pl.BlockSpec((C4, ncls), lambda p: (0, 0)),
            pl.BlockSpec((C4, 1), lambda p: (0, 0)),
        ],
        out_specs=pl.BlockSpec((H, H), lambda p: (0, 0)),
        compiler_params=pltpu.CompilerParams(
            dimension_semantics=("arbitrary",)),   # pooled-width is a reduction
    )(x_wnch, w1_eff, b1_eff, w2_eff, b2_eff)
    return out


def init_params(key, in_channels, num_classes):
    """Deterministic PyTorch-style (uniform +-1/sqrt(fan_in)) init."""
    c4 = in_channels // 4
    ks = jax.random.split(key, 6)

    def u(k, shape, fan_in):
        bound = 1.0 / math.sqrt(fan_in)
        return jax.random.uniform(k, shape, jnp.float32, -bound, bound)

    wemb = u(ks[0], (num_classes, in_channels), num_classes)
    bemb = u(ks[1], (in_channels,), num_classes)
    w1 = u(ks[2], (in_channels, c4), in_channels)
    b1 = u(ks[3], (c4,), in_channels)
    w2 = u(ks[4], (in_channels, c4), in_channels)
    b2 = u(ks[5], (c4,), in_channels)
    return wemb, bemb, w1, b1, w2, b2


def reference(x_nchw, params, num_joints):
    """Pure-JAX re-implementation of the PyTorch forward (for validation)."""
    wemb, bemb, w1, b1, w2, b2 = params
    emb = jnp.einsum('nchw,ce->nehw', x_nchw, wemb) + bemb[None, :, None, None]
    N, E, H, W = emb.shape
    pooled = emb.reshape(N, E, H, W // num_joints, num_joints).mean(axis=-1)
    f1 = jnp.einsum('nehw,ef->nfhw', pooled, w1) + b1[None, :, None, None]
    f2 = jnp.einsum('nehw,ef->nfhw', pooled, w2) + b2[None, :, None, None]
    m = jnp.einsum('nfiw,nfjw->nfij', f1, f2)        # matmul(f1, f2^T)
    m = m.mean(axis=0).mean(axis=0)                  # mean over batch, channels
    return jax.nn.softmax(m, axis=-1)


if __name__ == "__main__":
    in_channels, num_classes, num_joints = 32, 4, 8
    N, H, W = 2, 16, 2 * num_joints                  # pooled width = 2 grid steps

    key = jax.random.PRNGKey(0)
    kx, kp = jax.random.split(key)
    x = jax.random.normal(kx, (N, num_classes, H, W), jnp.float32)
    params = init_params(kp, in_channels, num_classes)

    out = get_relative_map_pallas(x, params, num_joints)
    out = jax.block_until_ready(out)

    ref = reference(x, params, num_joints)
    assert out.shape == (H, H), out.shape
    if not bool(jnp.allclose(out, ref, atol=1e-5, rtol=1e-5)):
        raise AssertionError("Pallas kernel does not match reference")
    print("KERNEL_OK")
</pallas_src>

<mosaic_0001>
module attributes {stable_mosaic.version = 11 : i64} {
  func.func @relmap_kernel(%arg0: i32, %arg1: memref<8x2x4x16xf32, #tpu.memory_space<vmem>>, %arg2: memref<8x4xf32, #tpu.memory_space<vmem>>, %arg3: memref<8x1xf32, #tpu.memory_space<vmem>>, %arg4: memref<8x4xf32, #tpu.memory_space<vmem>>, %arg5: memref<8x1xf32, #tpu.memory_space<vmem>>, %arg6: memref<16x16xf32, #tpu.memory_space<vmem>>) attributes {dimension_semantics = [#tpu.dimension_semantics<arbitrary>], iteration_bounds = array<i64: 2>, scalar_prefetch = 0 : i64, scratch_operands = 0 : i64, tpu.core_type = #tpu.core_type<tc>, window_params = [{transform_indices = @transform_0, window_bounds = array<i64: 8, 2, 4, 16>}, {pipeline_mode = #tpu.pipeline_mode<synchronous>, transform_indices = @transform_1, window_bounds = array<i64: 8, 4>}, {pipeline_mode = #tpu.pipeline_mode<synchronous>, transform_indices = @transform_2, window_bounds = array<i64: 8, 1>}, {pipeline_mode = #tpu.pipeline_mode<synchronous>, transform_indices = @transform_3, window_bounds = array<i64: 8, 4>}, {pipeline_mode = #tpu.pipeline_mode<synchronous>, transform_indices = @transform_4, window_bounds = array<i64: 8, 1>}, {pipeline_mode = #tpu.pipeline_mode<synchronous>, transform_indices = @transform_5, window_bounds = array<i64: 16, 16>}]} {
    %c0_i32 = arith.constant 0 : i32
    %0 = arith.cmpi eq, %arg0, %c0_i32 : i32
    %1 = arith.extui %0 : i1 to i32
    %c0_i32_0 = arith.constant 0 : i32
    %2 = arith.cmpi ne, %1, %c0_i32_0 : i32
    scf.if %2 {
      %cst_52 = arith.constant 0.000000e+00 : f32
      %61 = vector.broadcast %cst_52 : f32 to vector<16x16xf32>
      %c0_53 = arith.constant 0 : index
      %c0_54 = arith.constant 0 : index
      %62 = vector.load %arg6[%c0_53, %c0_54] : memref<16x16xf32, #tpu.memory_space<vmem>>, vector<16x16xf32>
      tpu.vector_store %arg6[%c0_53, %c0_54], %61 {strides = array<i32>} : memref<16x16xf32, #tpu.memory_space<vmem>>, vector<16x16xf32>,
    } else {
    }
    %c0 = arith.constant 0 : index
    %c0_1 = arith.constant 0 : index
    %c0_2 = arith.constant 0 : index
    %c0_3 = arith.constant 0 : index
    %3 = vector.load %arg1[%c0, %c0_1, %c0_2, %c0_3] : memref<8x2x4x16xf32, #tpu.memory_space<vmem>>, vector<1x2x4x16xf32>
    %4 = vector.shape_cast %3 : vector<1x2x4x16xf32> to vector<2x4x16xf32>
    %c1 = arith.constant 1 : index
    %c0_4 = arith.constant 0 : index
    %c0_5 = arith.constant 0 : index
    %c0_6 = arith.constant 0 : index
    %5 = vector.load %arg1[%c1, %c0_4, %c0_5, %c0_6] : memref<8x2x4x16xf32, #tpu.memory_space<vmem>>, vector<1x2x4x16xf32>
    %6 = vector.shape_cast %5 : vector<1x2x4x16xf32> to vector<2x4x16xf32>
    %7 = arith.addf %4, %6 : vector<2x4x16xf32>
    %c2 = arith.constant 2 : index
    %c0_7 = arith.constant 0 : index
    %c0_8 = arith.constant 0 : index
    %c0_9 = arith.constant 0 : index
    %8 = vector.load %arg1[%c2, %c0_7, %c0_8, %c0_9] : memref<8x2x4x16xf32, #tpu.memory_space<vmem>>, vector<1x2x4x16xf32>
    %9 = vector.shape_cast %8 : vector<1x2x4x16xf32> to vector<2x4x16xf32>
    %10 = arith.addf %7, %9 : vector<2x4x16xf32>
    %c3 = arith.constant 3 : index
    %c0_10 = arith.constant 0 : index
    %c0_11 = arith.constant 0 : index
    %c0_12 = arith.constant 0 : index
    %11 = vector.load %arg1[%c3, %c0_10, %c0_11, %c0_12] : memref<8x2x4x16xf32, #tpu.memory_space<vmem>>, vector<1x2x4x16xf32>
    %12 = vector.shape_cast %11 : vector<1x2x4x16xf32> to vector<2x4x16xf32>
    %13 = arith.addf %10, %12 : vector<2x4x16xf32>
    %c4 = arith.constant 4 : index
    %c0_13 = arith.constant 0 : index
    %c0_14 = arith.constant 0 : index
    %c0_15 = arith.constant 0 : index
    %14 = vector.load %arg1[%c4, %c0_13, %c0_14, %c0_15] : memref<8x2x4x16xf32, #tpu.memory_space<vmem>>, vector<1x2x4x16xf32>
    %15 = vector.shape_cast %14 : vector<1x2x4x16xf32> to vector<2x4x16xf32>
    %16 = arith.addf %13, %15 : vector<2x4x16xf32>
    %c5 = arith.constant 5 : index
    %c0_16 = arith.constant 0 : index
    %c0_17 = arith.constant 0 : index
    %c0_18 = arith.constant 0 : index
    %17 = vector.load %arg1[%c5, %c0_16, %c0_17, %c0_18] : memref<8x2x4x16xf32, #tpu.memory_space<vmem>>, vector<1x2x4x16xf32>
    %18 = vector.shape_cast %17 : vector<1x2x4x16xf32> to vector<2x4x16xf32>
    %19 = arith.addf %16, %18 : vector<2x4x16xf32>
    %c6 = arith.constant 6 : index
    %c0_19 = arith.constant 0 : index
    %c0_20 = arith.constant 0 : index
    %c0_21 = arith.constant 0 : index
    %20 = vector.load %arg1[%c6, %c0_19, %c0_20, %c0_21] : memref<8x2x4x16xf32, #tpu.memory_space<vmem>>, vector<1x2x4x16xf32>
    %21 = vector.shape_cast %20 : vector<1x2x4x16xf32> to vector<2x4x16xf32>
    %22 = arith.addf %19, %21 : vector<2x4x16xf32>
    %c7 = arith.constant 7 : index
    %c0_22 = arith.constant 0 : index
    %c0_23 = arith.constant 0 : index
    %c0_24 = arith.constant 0 : index
    %23 = vector.load %arg1[%c7, %c0_22, %c0_23, %c0_24] : memref<8x2x4x16xf32, #tpu.memory_space<vmem>>, vector<1x2x4x16xf32>
    %24 = vector.shape_cast %23 : vector<1x2x4x16xf32> to vector<2x4x16xf32>
    %25 = arith.addf %22, %24 : vector<2x4x16xf32>
    %cst = arith.constant 1.250000e-01 : f32
    %26 = vector.broadcast %cst : f32 to vector<2x4x16xf32>
    %27 = arith.mulf %25, %26 : vector<2x4x16xf32>
    %28 = vector.extract_strided_slice %27 {offsets = [0, 0, 0], sizes = [1, 4, 16], strides = [1, 1, 1]} : vector<2x4x16xf32> to vector<1x4x16xf32>
    %29 = vector.shape_cast %28 : vector<1x4x16xf32> to vector<4x16xf32>
    %c0_25 = arith.constant 0 : index
    %c0_26 = arith.constant 0 : index
    %30 = vector.load %arg2[%c0_25, %c0_26] : memref<8x4xf32, #tpu.memory_space<vmem>>, vector<8x4xf32>
    %cst_27 = arith.constant dense<0.000000e+00> : vector<8x16xf32>
    %31 = tpu.matmul %30, %29, %cst_27 {dimension_numbers = #tpu.dot_dimension_numbers<[1], [0], [0], [1], [0, 0, 1, 1], [], []>} : vector<8x4xf32>, vector<4x16xf32>, vector<8x16xf32> -> vector<8x16xf32>
    %c0_28 = arith.constant 0 : index
    %c0_29 = arith.constant 0 : index
    %32 = vector.load %arg3[%c0_28, %c0_29] : memref<8x1xf32, #tpu.memory_space<vmem>>, vector<8x1xf32>
    %33 = vector.broadcast %32 : vector<8x1xf32> to vector<8x16xf32>
    %34 = arith.addf %31, %33 : vector<8x16xf32>
    %c0_30 = arith.constant 0 : index
    %c0_31 = arith.constant 0 : index
    %35 = vector.load %arg4[%c0_30, %c0_31] : memref<8x4xf32, #tpu.memory_space<vmem>>, vector<8x4xf32>
    %cst_32 = arith.constant dense<0.000000e+00> : vector<8x16xf32>
    %36 = tpu.matmul %35, %29, %cst_32 {dimension_numbers = #tpu.dot_dimension_numbers<[1], [0], [0], [1], [0, 0, 1, 1], [], []>} : vector<8x4xf32>, vector<4x16xf32>, vector<8x16xf32> -> vector<8x16xf32>
    %c0_33 = arith.constant 0 : index
    %c0_34 = arith.constant 0 : index
    %37 = vector.load %arg5[%c0_33, %c0_34] : memref<8x1xf32, #tpu.memory_space<vmem>>, vector<8x1xf32>
    %38 = vector.broadcast %37 : vector<8x1xf32> to vector<8x16xf32>
    %39 = arith.addf %36, %38 : vector<8x16xf32>
    %cst_35 = arith.constant dense<0.000000e+00> : vector<16x16xf32>
    %40 = tpu.matmul %34, %39, %cst_35 {dimension_numbers = #tpu.dot_dimension_numbers<[0], [0], [1], [1], [0, 1, 1, 1], [], []>} : vector<8x16xf32>, vector<8x16xf32>, vector<16x16xf32> -> vector<16x16xf32>
    %41 = vector.extract_strided_slice %27 {offsets = [1, 0, 0], sizes = [1, 4, 16], strides = [1, 1, 1]} : vector<2x4x16xf32> to vector<1x4x16xf32>
    %42 = vector.shape_cast %41 : vector<1x4x16xf32> to vector<4x16xf32>
    %c0_36 = arith.constant 0 : index
    %c0_37 = arith.constant 0 : index
    %43 = vector.load %arg2[%c0_36, %c0_37] : memref<8x4xf32, #tpu.memory_space<vmem>>, vector<8x4xf32>
    %cst_38 = arith.constant dense<0.000000e+00> : vector<8x16xf32>
    %44 = tpu.matmul %43, %42, %cst_38 {dimension_numbers = #tpu.dot_dimension_numbers<[1], [0], [0], [1], [0, 0, 1, 1], [], []>} : vector<8x4xf32>, vector<4x16xf32>, vector<8x16xf32> -> vector<8x16xf32>
    %c0_39 = arith.constant 0 : index
    %c0_40 = arith.constant 0 : index
    %45 = vector.load %arg3[%c0_39, %c0_40] : memref<8x1xf32, #tpu.memory_space<vmem>>, vector<8x1xf32>
    %46 = vector.broadcast %45 : vector<8x1xf32> to vector<8x16xf32>
    %47 = arith.addf %44, %46 : vector<8x16xf32>
    %c0_41 = arith.constant 0 : index
    %c0_42 = arith.constant 0 : index
    %48 = vector.load %arg4[%c0_41, %c0_42] : memref<8x4xf32, #tpu.memory_space<vmem>>, vector<8x4xf32>
    %cst_43 = arith.constant dense<0.000000e+00> : vector<8x16xf32>
    %49 = tpu.matmul %48, %42, %cst_43 {dimension_numbers = #tpu.dot_dimension_numbers<[1], [0], [0], [1], [0, 0, 1, 1], [], []>} : vector<8x4xf32>, vector<4x16xf32>, vector<8x16xf32> -> vector<8x16xf32>
    %c0_44 = arith.constant 0 : index
    %c0_45 = arith.constant 0 : index
    %50 = vector.load %arg5[%c0_44, %c0_45] : memref<8x1xf32, #tpu.memory_space<vmem>>, vector<8x1xf32>
    %51 = vector.broadcast %50 : vector<8x1xf32> to vector<8x16xf32>
    %52 = arith.addf %49, %51 : vector<8x16xf32>
    %cst_46 = arith.constant dense<0.000000e+00> : vector<16x16xf32>
    %53 = tpu.matmul %47, %52, %cst_46 {dimension_numbers = #tpu.dot_dimension_numbers<[0], [0], [1], [1], [0, 1, 1, 1], [], []>} : vector<8x16xf32>, vector<8x16xf32>, vector<16x16xf32> -> vector<16x16xf32>
    %54 = arith.addf %40, %53 : vector<16x16xf32>
    %c0_47 = arith.constant 0 : index
    %c0_48 = arith.constant 0 : index
    %55 = vector.load %arg6[%c0_47, %c0_48] : memref<16x16xf32, #tpu.memory_space<vmem>>, vector<16x16xf32>
    %56 = arith.addf %55, %54 : vector<16x16xf32>
    %c0_49 = arith.constant 0 : index
    %c0_50 = arith.constant 0 : index
    %57 = vector.load %arg6[%c0_49, %c0_50] : memref<16x16xf32, #tpu.memory_space<vmem>>, vector<16x16xf32>
    tpu.vector_store %arg6[%c0_49, %c0_50], %56 {strides = array<i32>} : memref<16x16xf32, #tpu.memory_space<vmem>>, vector<16x16xf32>,
    %c1_i32 = arith.constant 1 : i32
    %58 = arith.cmpi eq, %arg0, %c1_i32 : i32
    %59 = arith.extui %58 : i1 to i32
    %c0_i32_51 = arith.constant 0 : i32
    %60 = arith.cmpi ne, %59, %c0_i32_51 : i32
    scf.if %60 {
      %c0_52 = arith.constant 0 : index
      %c0_53 = arith.constant 0 : index
      %61 = vector.load %arg6[%c0_52, %c0_53] : memref<16x16xf32, #tpu.memory_space<vmem>>, vector<16x16xf32>
      %cst_54 = arith.constant 6.250000e-02 : f32
      %62 = vector.broadcast %cst_54 : f32 to vector<16x16xf32>
      %63 = arith.mulf %61, %62 : vector<16x16xf32>
      %cst_55 = arith.constant dense<0xFF800000> : vector<16xf32>
      %64 = vector.multi_reduction <maximumf>, %63, %cst_55 [1] : vector<16x16xf32> to vector<16xf32>
      %65 = vector.shape_cast %64 : vector<16xf32> to vector<16x1xf32>
      %66 = vector.broadcast %65 : vector<16x1xf32> to vector<16x16xf32>
      %67 = arith.subf %63, %66 : vector<16x16xf32>
      %68 = math.exp %67 : vector<16x16xf32>
      %cst_56 = arith.constant dense<0.000000e+00> : vector<16xf32>
      %69 = vector.multi_reduction <add>, %68, %cst_56 [1] : vector<16x16xf32> to vector<16xf32>
      %70 = vector.shape_cast %69 : vector<16xf32> to vector<16x1xf32>
      %71 = tpu.reciprocal %70 : vector<16x1xf32> -> vector<16x1xf32>
      %72 = vector.broadcast %71 : vector<16x1xf32> to vector<16x16xf32>
      %73 = arith.mulf %68, %72 : vector<16x16xf32>
      %c0_57 = arith.constant 0 : index
      %c0_58 = arith.constant 0 : index
      %74 = vector.load %arg6[%c0_57, %c0_58] : memref<16x16xf32, #tpu.memory_space<vmem>>, vector<16x16xf32>
      tpu.vector_store %arg6[%c0_57, %c0_58], %73 {strides = array<i32>} : memref<16x16xf32, #tpu.memory_space<vmem>>, vector<16x16xf32>,
    } else {
    }
    return
  }
  func.func @transform_0(%arg0: i32) -> (i32, i32, i32, i32) {
    %c0_i32 = arith.constant 0 : i32
    %c0_i32_0 = arith.constant 0 : i32
    %c0_i32_1 = arith.constant 0 : i32
    %c0_i32_2 = arith.constant 0 : i32
    return %arg0, %c0_i32, %c0_i32_0, %c0_i32_1 : i32, i32, i32, i32
  }
  func.func @transform_1(%arg0: i32) -> (i32, i32) {
    %c0_i32 = arith.constant 0 : i32
    %c0_i32_0 = arith.constant 0 : i32
    %c0_i32_1 = arith.constant 0 : i32
    return %c0_i32, %c0_i32_0 : i32, i32
  }
  func.func @transform_2(%arg0: i32) -> (i32, i32) {
    %c0_i32 = arith.constant 0 : i32
    %c0_i32_0 = arith.constant 0 : i32
    %c0_i32_1 = arith.constant 0 : i32
    return %c0_i32, %c0_i32_0 : i32, i32
  }
  func.func @transform_3(%arg0: i32) -> (i32, i32) {
    %c0_i32 = arith.constant 0 : i32
    %c0_i32_0 = arith.constant 0 : i32
    %c0_i32_1 = arith.constant 0 : i32
    return %c0_i32, %c0_i32_0 : i32, i32
  }
  func.func @transform_4(%arg0: i32) -> (i32, i32) {
    %c0_i32 = arith.constant 0 : i32
    %c0_i32_0 = arith.constant 0 : i32
    %c0_i32_1 = arith.constant 0 : i32
    return %c0_i32, %c0_i32_0 : i32, i32
  }
  func.func @transform_5(%arg0: i32) -> (i32, i32) {
    %c0_i32 = arith.constant 0 : i32
    %c0_i32_0 = arith.constant 0 : i32
    %c0_i32_1 = arith.constant 0 : i32
    return %c0_i32, %c0_i32_0 : i32, i32
  }
}

</mosaic_0001>

<bundles_post_ra>
// kernel: tpu_custom_call.1
= control target key start
LH: loop header
LB: loop body
LE: loop exit
PB: predicated region body
PF: predicated region fallthrough
CT: control target
= control target key end

     0   :  { %10 = vsyncpa [#allocation3], 0  ;;  %s1374_s0 = inlined_call_operand.hbm [shape: f32[16,2,4,16], index: 0, kind: input, shape index: {}]   ;;  %s1375_s1 = inlined_call_operand.vmem [shape: f32[8,4], index: 1, kind: input, shape index: {}]   ;;  %s1376_s2 = inlined_call_operand.vmem [shape: f32[8,1], index: 2, kind: input, shape index: {}]   ;;  %s1377_s3 = inlined_call_operand.vmem [shape: f32[8,4], index: 3, kind: input, shape index: {}]   ;;  %s1378_s4 = inlined_call_operand.vmem [shape: f32[8,1], index: 4, kind: input, shape index: {}]   ;;  %s1379_s5 = inlined_call_operand.hbm [shape: f32[16,16], index: 5, kind: output, shape index: {}]  }
   0x1   :  { %12 = vsyncpa [#allocation3 + $0x1], 0 }
   0x2   :  { %13 = vsyncpa [#allocation4], 0  ;;  %s1200_s18 = smov 0   ;;  %s1202_s19 = smov 0  }
   0x3   :  { %s1204_s20 = smov 0   ;;  %s1206_s21 = smov 0  }
   0x4 LB: > { %s1219_s22 = sadd.s32 4294967295, %s1158_s21   ;;  %s1222_s23 = sadd.s32 1, %s1158_s21   ;;  %s1158_s21 = sphi %s1206_s21, %s1386_s21   ;;  %s1154_s20 = sphi %s1204_s20, %s1385_s20   ;;  %s1150_s19 = sphi %s1202_s19, %s1384_s19   ;;  %s1146_s18 = sphi %s1200_s18, %s1383_s18  }
   0x5   : > { %s23_s24 = ssub.s32 %s1158_s21, %s1222_s23  ;;  %s26_s25 = sadd.s32 1, %s1154_s20 }
   0x6   : > { %p24_p0 = scmp.eq.s32.totalorder %s23_s24, 0  ;;  %p33_p1 = scmp.ne.s32.totalorder %s1154_s20, %s1150_s19 }
   0x7   : > { %p34_p2 = scmp.eq.s32.totalorder %s1158_s21, 0  ;;  %p39_p3 = scmp.ne.s32.totalorder %s1150_s19, %s1146_s18 }
   0x8   : > { %s1232_s26 = scalar_select %p24_p0, %s1154_s20, %s26_s25  }
   0x9   : > { %p35_p4 = por %p34_p2, %p33_p1  ;;  %p40_p5 = scmp.eq.s32.totalorder %s1219_s22, 0 }
   0xa   : > { %p1011_p6 = scmp.lt.s32.totalorder %s1158_s21, 2  ;;  %s180_s28 = sand.u32 1, %s1154_s20  }
   0xb   : > { %p1236_p7 = por %p40_p5, %p39_p3  ;;  %s915_s29 = sshll.u32 %s180_s28, 6 }
   0xc   : > { %s954_s30 = sshll.u32 %s1158_s21, 10  ;;  %s184_s9 = scalar_lea.vmem [#allocation2], %s915_s29 }
   0xd   : > { %s1245_s8 = scalar_lea.hbm %s1374_s0, %s954_s30  ;;  %s192_s10 = sshll.u32 %s184_s9, 4  ;;  %s1247_s10 = int_to_ptr.vmem [resolvable:$true] %s192_s10 }
   0xe   : > { %p1249_p8 = pnand %p1011_p6, %p35_p4  ;;  %s1254_s12 = scalar_lea.sflag [#allocation3], %s180_s28 }
   0xf   : > { %s1064_s13 = scalar_lea.hbm %s1245_s8, 1024  ;;  %s1069_s16 = scalar_lea.hbm %s1374_s0, 2048 }
  0x10   : > { %p1065_p10 = scmp.ne.s32.totalorder %s1245_s8, %s1064_s13  ;;  %p1066_p11 = pneg %p1249_p8 }
  0x11   : > { %p1070_p0 = scmp.lt.u32.totalorder %s1245_s8, %s1374_s0  ;;  %p1071_p1 = scmp.lt.u32.totalorder %s1069_s16, %s1064_s13 }
  0x12   : > { %p1067_p12 = pnand %p1066_p11, %p1065_p10  ;;  %p1073_p3 = scmp.lt.u32.totalorder %s1064_s13, %s1245_s8 }
  0x13   : > { %p1072_p2 = por %p1071_p1, %p1070_p0 }
  0x14   : > { %p1068_p13 = pneg %p1067_p12 }
  0x15   : > { %p1074_p4 = por %p1073_p3, %p1072_p2 }
  0x17   : > { %p1075_p5 = pnand %p1074_p4, %p1068_p13 }
  0x19   : > { %1078 = shalt.err (!%p1075_p5)
}
  0x1a   : > { %s1079_s24 = scalar_lea.vmem %s1247_s10, 1024  ;;  %s1160_s25 = smov [#allocation2]  }
  0x1b   : > { %p1080_p6 = scmp.ne.s32.totalorder %s1247_s10, %s1079_s24  ;;  %s1084_s28 = sshll.u32 %s1160_s25, 4  ;;  %s1085_s28 = int_to_ptr.vmem [resolvable:$false] %s1084_s28 }
  0x1c   : > { %s1086_s29 = scalar_lea.vmem %s1085_s28, 2048  ;;  %p1087_p9 = scmp.lt.s32.totalorder %s1247_s10, %s1085_s28 }
  0x1d   : > { %p1082_p10 = pnand %p1080_p6, %p1066_p11  ;;  %p1088_p0 = scmp.lt.s32.totalorder %s1086_s29, %s1079_s24 }
  0x1f   : > { %p1083_p12 = pneg %p1082_p10  ;;  %p1089_p1 = por %p1088_p0, %p1087_p9 }
  0x21   : > { %p1090_p2 = pnand %p1089_p1, %p1083_p12 }
  0x23   : > { %1093 = shalt.err (!%p1090_p2)
}
  0x24   : > { %s1161_s30 = smov 64   ;;  %s1162_s6 = smov 4  }
  0x25   : > { %1010 = dma.hbm_to_vmem [thread:$0]  (!%p1249_p8), %s1245_s8, 1024, %s1247_s10, %s1254_s12, %s1161_s30, %s1161_s30, %s1162_s6  }
  0x26   : > { %p200_p11 = scmp.lt.s32.totalorder %s1158_s21, 3  ;;  %p1382_p13 = scmp.ge.s32.totalorder %s1158_s21, 1 }
  0x28   : > { %p201_p3 = pnand %p1382_p13, %p200_p11 }
  0x29   : > { %s206_s7 = sand.u32 (!%p201_p3), 1, %s1150_s19  }
  0x2a   : > { %204 = sbr.rel (%p201_p3) target bundleno = 1005 (0x3ed), region = 40  ;;  %s920_s9 = sshll.u32 (!%p201_p3), %s206_s7, 6 }
  0x2b   : > { %s207_s13 = scalar_lea.sflag (!%p201_p3), [#allocation3], %s206_s7  ;;  %s1286_s14 = scalar_lea.vmem (!%p201_p3), [#allocation2], %s920_s9 }
  0x31   : > { %1137 = dma.done.wait (%p1236_p7), %s207_s13, 1024  }
  0x32   : > { %1139 = vsyncadd (%p1236_p7), %s207_s13, 4294966272  ;;  %p921_p9 = scmp.ne.s32.totalorder %s1219_s22, 0 }
  0x33   : > { %vm237_vm0 = vcmask (!%p921_p9), 130048   ;;  %v1163_v0 = vmov (!%p921_p9), 0.0  }
  0x34   : > { %236 = sbr.rel (%p921_p9) target bundleno = 59 (0x3b), region = 48  ;;  %238 = vst.msk [vmem:[#allocation5] sm:$0xff] (!%p921_p9), %vm237_vm0, %v1163_v0  ;;  %239 = vst.msk [vmem:[#allocation5 + $0x8] sm:$0xff] (!%p921_p9), %vm237_vm0, %v1163_v0 }
  0x3b PF: > { %v240_v1 = vld [vmem:[%s1286_s14] sm:$0xf]  ;;  %v922_v2 = vld [vmem:[%s1286_s14 + $0x8] sm:$0xf]  ;;  %v1164_v3 = vmov 0.0   ;;  %vm1165_vm1 = vmmov 0  }
  0x3c   : > { %969 = vmatprep.subr.mxu1 %v1164_v3  ;;  %979 = vmatprep.subr.mxu0 %v1164_v3  ;;  %v245_v4 = vadd.f32 %v922_v2, %v240_v1  ;;  %v924_v5 = vld [vmem:[%s1286_s14 + $0x10] sm:$0xf]  ;;  %v926_v6 = vld [vmem:[%s1286_s14 + $0x18] sm:$0xf]  ;;  %v241_v8 = vld [vmem:[%s1286_s14 + $0x4] sm:$0xf] }
  0x3d   : > { %v923_v9 = vld [vmem:[%s1286_s14 + $0xc] sm:$0xf]  ;;  %v928_v10 = vld [vmem:[%s1286_s14 + $0x20] sm:$0xf]  ;;  %971 = vmatprep.mubr.msk.f32.mxu1 %vm1165_vm1, %v1164_v3  ;;  %v925_v12 = vld [vmem:[%s1286_s14 + $0x14] sm:$0xf]  ;;  %981 = vmatprep.mubr.msk.f32.mxu0 %vm1165_vm1, %v1164_v3 }
  0x3e   : > { %v250_v7 = vadd.f32 %v924_v5, %v245_v4  ;;  %v246_v11 = vadd.f32 %v923_v9, %v241_v8  ;;  %v927_v14 = vld [vmem:[%s1286_s14 + $0x1c] sm:$0xf]  ;;  %v930_v15 = vld [vmem:[%s1286_s14 + $0x28] sm:$0xf]  ;;  %v280_v17 = vld [vmem:[%s1376_s2] sm:$0xff]  ;;  %v1166_v20 = vmov 0  }
  0x3f   : > { %v929_v19 = vld [vmem:[%s1286_s14 + $0x24] sm:$0xf]  ;;  %1055 = vset.pattern.permute.xlu0 %v1166_v20  ;;  %v932_v21 = vld [vmem:[%s1286_s14 + $0x30] sm:$0xf]  ;;  %v931_v24 = vld [vmem:[%s1286_s14 + $0x2c] sm:$0xf] }
  0x40   : > { %v255_v13 = vadd.f32 %v926_v6, %v250_v7  ;;  %v251_v16 = vadd.f32 %v925_v12, %v246_v11  ;;  %283 = vperm.xlu0 %1055, %v280_v17   ;;  %v365_v25 = vld [vmem:[%s1378_s4] sm:$0xff]  ;;  %v934_v26 = vld [vmem:[%s1286_s14 + $0x38] sm:$0xf]  ;;  %v933_v29 = vld [vmem:[%s1286_s14 + $0x34] sm:$0xf]  ;;  %vm290_vm2 = vcmask 1043456  }
  0x41   : > { %v935_v32 = vld [vmem:[%s1286_s14 + $0x3c] sm:$0xf]  ;;  %v279_v35 = vld [vmem:[%s1375_s1] sm:$0xff]  ;;  %vm286_vm3 = vcmask 31744   ;;  %vm619_vm4 = vcmask 64512   ;;  %v815_v57 = vld [vmem:[#allocation5 + $0x8] sm:$0xff] }
  0x42   : > { %v260_v18 = vadd.f32 %v928_v10, %v255_v13  ;;  %v256_v22 = vadd.f32 %v927_v14, %v251_v16  ;;  %v364_v38 = vld [vmem:[%s1377_s3] sm:$0xff]  ;;  %vm818_vm5 = vcmask 130048   ;;  %p948_p7 = scmp.ne.s32.totalorder %s1219_s22, 1 }
  0x43   : > { %v814_v58 = vld [vmem:[#allocation5] sm:$0xff] }
  0x44   : > { %v265_v23 = vadd.f32 %v930_v15, %v260_v18  ;;  %v261_v27 = vadd.f32 %v929_v19, %v256_v22  ;;  %368 = vperm.xlu0 %1055, %v365_v25  }
  0x46   : > { %v270_v28 = vadd.f32 %v932_v21, %v265_v23  ;;  %v266_v30 = vadd.f32 %v931_v24, %v261_v27 }
  0x48   : > { %v275_v31 = vadd.f32 %v934_v26, %v270_v28  ;;  %v271_v33 = vadd.f32 %v933_v29, %v266_v30 }
  0x4a   : > { %v277_v34 = vmul.f32 0.125, %v275_v31  ;;  %v276_v36 = vadd.f32 %v935_v32, %v271_v33 }
  0x4c   : > { %970 = vmatpush3.msk.msra.mxu1 %vm290_vm2, %v277_v34  ;;  %v278_v37 = vmul.f32 0.125, %v276_v36 }
  0x4d   : > { %972 = vmatmul.mubr.msk.f32.vlgmr.msra.gmra.mrb[0].mxu1 %vm286_vm3, %v279_v35  ;;  %974 = vmatprep.subr.mxu1 %v1164_v3 }
  0x4e   : > { %975 = vmatpush3.msk.msra.mxu1 %vm290_vm2, %v277_v34  ;;  %976 = vmatprep.mubr.msk.f32.mxu1 %vm1165_vm1, %v1164_v3 }
  0x4f   : > { %980 = vmatpush3.msk.msra.mxu0 %vm290_vm2, %v278_v37  ;;  %984 = vmatprep.subr.mxu1 %v1164_v3 }
  0x50   : > { %982 = vmatmul.mubr.msk.f32.vlgmr.msra.gmra.mrb[0].mxu0 %vm286_vm3, %v279_v35 }
  0x51   : > { %977 = vmatmul.mubr.msk.f32.vlgmr.msra.gmra.mrb[2].mxu1 %vm286_vm3, %v364_v38 }
  0x52   : > { %985 = vmatpush3.msk.msra.mxu1 %vm290_vm2, %v278_v37  ;;  %986 = vmatprep.mubr.msk.f32.mxu1 %vm1165_vm1, %v1164_v3 }
  0x55   : > { %987 = vmatmul.mubr.msk.f32.vlgmr.msra.gmra.mrb[4].mxu1 %vm286_vm3, %v364_v38 }
  0xbf   : > { %v284_v41 = vpop.permute.xlu0 %283 }
  0xc3   : > { %v369_v47 = vpop.permute.xlu0 %368 }
 0x120   : > { %v360_v39 = vpop.f32.mrb[0].mxu1 }
 0x121   : > { %v973_v40 = vpop.f32.mrb[1].mxu1  ;;  %v361_v49 = vadd.f32 %v360_v39, %v284_v41 }
 0x123   : > { %v513_v42 = vpop.f32.mrb[0].mxu0 }
 0x124   : > { %v983_v43 = vpop.f32.mrb[1].mxu0  ;;  %v514_v44 = vadd.f32 %v513_v42, %v284_v41  ;;  %v440_v45 = vpop.f32.mrb[2].mxu1 }
 0x125   : > { %v978_v46 = vpop.f32.mrb[3].mxu1  ;;  %v441_v52 = vadd.f32 %v440_v45, %v369_v47 }
 0x126   : > { %587 = vxpose.xlu1.b32.start.end [1/1] (short) (narrow) %v514_v44, 16 }
 0x128   : > { %v583_v48 = vpop.f32.mrb[4].mxu1 }
 0x129   : > { %v584_v50 = vadd.f32 %v583_v48, %v369_v47  ;;  %v988_v51 = vpop.f32.mrb[5].mxu1 }
 0x12b   : > { %701 = vxpose.xlu1.b32.start.end [1/1] (short) (narrow) %v361_v49, 16  ;;  %989 = vmatprep.subr.mxu0 %v584_v50 }
 0x12c   : > { %990 = vmatpush3.msra.mxu0 %v584_v50 }
 0x12d   : > { %994 = vmatprep.subr.mxu0 %v441_v52 }
 0x1a6   : > { %v603_v53 = vpop.trf.xlu1 }
 0x1a7   : > { %991 = vmatprep.mubr.msk.f32.mxu0 %vm619_vm4, %v603_v53 }
 0x1aa   : > { %v604_v54 = vpop.trf.xlu1 }
 0x1ab   : > { %992 = vmatmul.mubr.msk.f32.vlgmr.msra.gmra.mrb[2].mxu0 %vm619_vm4, %v604_v54 }
 0x1ac   : > { %995 = vmatpush3.msra.mxu0 %v441_v52 }
 0x1ae   : > { %v717_v55 = vpop.trf.xlu1 }
 0x1af   : > { %996 = vmatprep.mubr.msk.f32.mxu0 %vm619_vm4, %v717_v55 }
 0x1b2   : > { %v718_v56 = vpop.trf.xlu1 }
 0x1b3   : > { %997 = vmatmul.mubr.msk.f32.vlgmr.msra.gmra.mrb[2].mxu0 %vm619_vm4, %v718_v56 }
 0x284   : > { %824 = sbr.rel (%p948_p7) target bundleno = 979 (0x3d3), region = 52 }
 0x286   : > { %v998_v59 = vpop.f32.mrb[2].mxu0 }
 0x287   : > { %v817_v60 = vadd.f32 %v998_v59, %v815_v57  ;;  %v805_v61 = vpop.f32.mrb[3].mxu0 }
 0x288   : > { %v816_v62 = vadd.f32 %v814_v58, %v805_v61 }
 0x289   : > { %820 = vst.msk [vmem:[#allocation5 + $0x8] sm:$0xff] %vm818_vm5, %v817_v60 }
 0x28a   : > { %819 = vst.msk [vmem:[#allocation5] sm:$0xff] %vm818_vm5, %v816_v62 }
 0x290   : > { %v826_v0 = vld [vmem:[#allocation5 + $0x8] sm:$0xff] }
 0x291   : > { %v825_v63 = vld [vmem:[#allocation5] sm:$0xff]  ;;  %v828_v2 = vmul.f32 0.0625, %v826_v0 }
 0x292   : > { %v827_v1 = vmul.f32 0.0625, %v825_v63 }
 0x293   : > { %v832_v4 = vsel %vm818_vm5, %v828_v2, -inf }
 0x294   : > { %v829_v3 = vsel %vm818_vm5, %v827_v1, -inf }
 0x295   : > { %830 = vmax.xlane.f32.xlu0 %v829_v3 }
 0x299   : > { %833 = vmax.xlane.f32.xlu0 %v832_v4 }
 0x322   : > { %v831_v5 = vpop.xlane.xlu0 %830 }
 0x323   : > { %v835_v6 = vsub.f32 %v827_v1, %v831_v5 }
 0x325   : > { %v837_v7 = vmul.f32 1.442695, %v835_v6 }
 0x326   : > { %v834_v8 = vpop.xlane.xlu0 %833 }
 0x327   : > { %1056 = vpow2.f32 %v837_v7  ;;  %v836_v9 = vsub.f32 %v828_v2, %v834_v8 }
 0x329   : > { %v839_v10 = vmul.f32 1.442695, %v836_v9 }
 0x32b   : > { %1058 = vpow2.f32 %v839_v10 }
 0x331   : > { %v1057_v11 = vpop.eup %1056 }
 0x332   : > { %v841_v12 = vsel %vm818_vm5, %v1057_v11, 0.0 }
 0x333   : > { %842 = vadd.xlane.f32.xlu1 %v841_v12 }
 0x335   : > { %v1059_v13 = vpop.eup %1058 }
 0x336   : > { %v844_v14 = vsel %vm818_vm5, %v1059_v13, 0.0 }
 0x337   : > { %845 = vadd.xlane.f32.xlu1 %v844_v14 }
 0x3c0   : > { %v843_v15 = vpop.xlane.xlu1 %842 }
 0x3c1   : > { %1060 = vrcp.f32 %v843_v15 }
 0x3c4   : > { %v846_v16 = vpop.xlane.xlu1 %845 }
 0x3c5   : > { %1062 = vrcp.f32 %v846_v16 }
 0x3cb   : > { %v1061_v17 = vpop.eup %1060 }
 0x3cc   : > { %v849_v18 = vmul.f32 %v1061_v17, %v1057_v11 }
 0x3ce   : > { %851 = vst.msk [vmem:[#allocation5] sm:$0xff] %vm818_vm5, %v849_v18 }
 0x3cf   : > { %v1063_v19 = vpop.eup %1062 }
 0x3d0   : > { %v850_v20 = vmul.f32 %v1063_v19, %v1059_v13 }
 0x3d2   : > { %852 = vst.msk [vmem:[#allocation5 + $0x8] sm:$0xff] %vm818_vm5, %v850_v20 }
 0x3d3 PF: > { %p1012_p8 = scmp.eq.s32.totalorder %s1219_s22, 1  ;;  %s1167_s17 = smov [#allocation5]  }
 0x3d4   : > { %s859_s18 = sshll.u32 %s1167_s17, 4  ;;  %s860_s18 = int_to_ptr.vmem [resolvable:$true] %s859_s18 }
 0x3d5   : > { %s1094_s24 = scalar_lea.vmem %s860_s18, 256  ;;  %p1101_p10 = scmp.lt.s32.totalorder %s860_s18, %s860_s18 }
 0x3d6   : > { %p1095_p4 = scmp.ne.s32.totalorder %s860_s18, %s1094_s24  ;;  %p1102_p12 = scmp.lt.s32.totalorder %s1094_s24, %s1094_s24 }
 0x3d8   : > { %p1096_p5 = pnand %p1095_p4, %p1012_p8  ;;  %p1103_p0 = por %p1102_p12, %p1101_p10 }
 0x3da   : > { %p1097_p6 = pneg %p1096_p5 }
 0x3dc   : > { %p1104_p1 = pnand %p1103_p0, %p1097_p6 }
 0x3de   : > { %1107 = shalt.err (!%p1104_p1)
}
 0x3df   : > { %s1108_s29 = scalar_lea.hbm %s1379_s5, 256 }
 0x3e0   : > { %p1109_p2 = scmp.ne.s32.totalorder %s1379_s5, %s1108_s29  ;;  %p1114_p3 = scmp.lt.u32.totalorder %s1108_s29, %s1379_s5 }
 0x3e2   : > { %p1110_p11 = pnand %p1109_p2, %p1012_p8 }
 0x3e4   : > { %p1111_p13 = pneg %p1110_p11 }
 0x3e6   : > { %p1116_p9 = pnand %p1114_p3, %p1111_p13 }
 0x3e8   : > { %1119 = shalt.err (!%p1116_p9)
}
 0x3e9   : > { %s1168_s13 = smov 128   ;;  %s1169_s14 = smov 8  }
 0x3ea   : > { %1004 = dma.vmem_to_hbm [thread:$0]  (%p1012_p8), %s860_s18, 256, %s1379_s5, [#allocation4], %s1168_s13, %s1168_s13, %s1169_s14  }
 0x3eb   : > { %1141 = dma.done.wait (%p1012_p8), [#allocation4], 256  }
 0x3ec   : > { %1143 = vsyncadd (%p1012_p8), [#allocation4], 4294967040 }
 0x3ed PF: > { %p16_p7 = scmp.ge.s32.totalorder %s1222_s23, 4   ;;  %s1383_s18 = smov %s1150_s19 }
 0x3ee   : > { %s1384_s19 = smov %s1154_s20  ;;  %s1385_s20 = smov %s1232_s26 }
 0x3ef   : > { %s1386_s21 = smov %s1222_s23  ;;  %18 = sbr.rel (!%p16_p7) target bundleno = 4 (0x4), region = 92 }
 0x3f6   :  { %875 = vsyncpa [#allocation3], 1 }
 0x3f7   :  { %877 = vsyncpa [#allocation3 + $0x1], 1 }
 0x3f8   :  { %878 = vsyncpa [#allocation4], 1 }
 0x3f9   :  { %880 = vsyncpa [#allocation4 + $0x1], 1 }

</bundles_post_ra>
